<compile_context>
chip_gen: v7x
topology: tpu7x:2x2x1
jax: 0.10.0
libtpu: 0.0.40
codegen_flags: <defaults>
</compile_context>

<pallas_src>
import functools
import math

import numpy as np
import jax
import jax.numpy as jnp
from jax import lax
from jax.experimental import pallas as pl
from jax.experimental.pallas import tpu as pltpu


# ----------------------------- constants / buffers ---------------------------
def make_sinusoidal_pe(max_length, d_x):
    """Same construction as the PyTorch module's registered `pe` buffer."""
    position = np.arange(max_length, dtype=np.float32)[:, None]
    div_term = np.exp(np.arange(0, d_x, 2, dtype=np.float32) * -(math.log(10000.0) / d_x))
    pe = np.zeros((max_length, d_x), dtype=np.float32)
    pe[:, 0::2] = np.sin(position * div_term)
    pe[:, 1::2] = np.cos(position * div_term)
    return jnp.asarray(pe)


# ------------------------------- kernel bodies --------------------------------
def _compute_z(ids_ref, pe_ref, emb_ref, w_ref, b_ref, *, d_vocab, d_x):
    """z = x * (linear(x) + 1) for one row tile.  Returns f32 (TR, d_x)."""
    tr = ids_ref.shape[0]
    ids = ids_ref[...]                                              # (TR, 1) int32
    # Embedding gather as (bf16) one-hot @ table on the MXU — no gather op,
    # no HBM intermediates.  One-hot values 0/1 are exact in bf16.
    vocab_iota = lax.broadcasted_iota(jnp.int32, (tr, d_vocab), 1)
    onehot = (vocab_iota == ids).astype(jnp.bfloat16)               # (TR, d_vocab)
    tok = jnp.dot(onehot, emb_ref[...],
                  preferred_element_type=jnp.float32)               # (TR, d_x) f32
    # scale + positional add (pe already pre-tiled to rows in the wrapper)
    x = tok * jnp.float32(math.sqrt(d_x)) + pe_ref[...]             # f32
    # r = linear(x) + 1 ; contraction on last dims of both operands
    # (== x @ W.T + b with W in PyTorch (out,in) layout, no transpose).
    r = lax.dot_general(x.astype(jnp.bfloat16), w_ref[...],
                        dimension_numbers=(((1,), (1,)), ((), ())),
                        preferred_element_type=jnp.float32)
    r = r + b_ref[...] + 1.0
    # NOTE: d_x=32 < 128 lanes -> masked partial stores; pad/block d_x toward
    # 128 if the surrounding model allows it at scale.
    return x * r                                                    # dropout = identity


def _embed_fwd_kernel(ids_ref, pe_ref, emb_ref, w_ref, b_ref, z_ref,
                      *, d_vocab, d_x):
    z_ref[...] = _compute_z(ids_ref, pe_ref, emb_ref, w_ref, b_ref,
                            d_vocab=d_vocab, d_x=d_x)


def _embed_fwd_fused_kernel(ids_ref, pe_ref, emb_ref, w_ref, b_ref,
                            z_ref, logits_ref, *, d_vocab, d_x):
    z = _compute_z(ids_ref, pe_ref, emb_ref, w_ref, b_ref,
                   d_vocab=d_vocab, d_x=d_x)
    z_ref[...] = z
    # logits = z @ E^T, fused so z never leaves VMEM and E is DMA'd once.
    logits_ref[...] = lax.dot_general(z.astype(jnp.bfloat16), emb_ref[...],
                                      dimension_numbers=(((1,), (1,)), ((), ())),
                                      preferred_element_type=jnp.float32)


def _transpose_fwd_kernel(z_ref, emb_ref, o_ref):
    o_ref[...] = lax.dot_general(z_ref[...].astype(jnp.bfloat16), emb_ref[...],
                                 dimension_numbers=(((1,), (1,)), ((), ())),
                                 preferred_element_type=jnp.float32)


# --------------------------------- wrappers -----------------------------------
_PARALLEL = pltpu.CompilerParams(dimension_semantics=("parallel",))


def _row_tile(n_rows, max_tile=256):
    # Full extent when it fits, otherwise 256-row tiles (multiple of 8 sublanes).
    return n_rows if n_rows <= max_tile else max_tile


def _fwd_in_specs(tr, d_vocab, d_x):
    return [
        pl.BlockSpec((tr, 1), lambda i: (i, 0)),           # token ids (row tile)
        pl.BlockSpec((tr, d_x), lambda i: (i, 0)),         # pre-tiled pe (row tile)
        pl.BlockSpec((d_vocab, d_x), lambda i: (0, 0)),    # emb (bf16, VMEM-resident)
        pl.BlockSpec((d_x, d_x), lambda i: (0, 0)),        # linear W (bf16, out,in)
        pl.BlockSpec((1, d_x), lambda i: (0, 0)),          # linear bias (f32)
    ]


def _fwd_inputs(src, emb, pe, w, b):
    B, S = src.shape
    d_x = emb.shape[1]
    n = B * S
    ids = src.reshape(n, 1).astype(jnp.int32)
    pe_tiled = jnp.tile(pe[:S], (B, 1))                    # (B*S, d_x), hoisted broadcast
    return ids, pe_tiled, emb.astype(jnp.bfloat16), w.astype(jnp.bfloat16), b.reshape(1, d_x)


def embedding_forward(src, emb, pe, w, b):
    """forward(): z = dropout(x * (linear(x)+1)).  src: (B, S) int32 -> (B, S, d_x)."""
    B, S = src.shape
    d_vocab, d_x = emb.shape
    n = B * S
    tr = _row_tile(n)
    kern = functools.partial(_embed_fwd_kernel, d_vocab=d_vocab, d_x=d_x)
    z = pl.pallas_call(
        kern,
        grid=(pl.cdiv(n, tr),),
        in_specs=_fwd_in_specs(tr, d_vocab, d_x),
        out_specs=pl.BlockSpec((tr, d_x), lambda i: (i, 0)),
        out_shape=jax.ShapeDtypeStruct((n, d_x), jnp.float32),
        compiler_params=_PARALLEL,
    )(*_fwd_inputs(src, emb, pe, w, b))
    return z.reshape(B, S, d_x)


def embedding_forward_fused(src, emb, pe, w, b):
    """forward() + transpose_forward() fused in one pallas_call -> (z, logits)."""
    B, S = src.shape
    d_vocab, d_x = emb.shape
    n = B * S
    tr = _row_tile(n)
    kern = functools.partial(_embed_fwd_fused_kernel, d_vocab=d_vocab, d_x=d_x)
    z, logits = pl.pallas_call(
        kern,
        grid=(pl.cdiv(n, tr),),
        in_specs=_fwd_in_specs(tr, d_vocab, d_x),
        out_specs=(pl.BlockSpec((tr, d_x), lambda i: (i, 0)),
                   pl.BlockSpec((tr, d_vocab), lambda i: (i, 0))),
        out_shape=(jax.ShapeDtypeStruct((n, d_x), jnp.float32),
                   jax.ShapeDtypeStruct((n, d_vocab), jnp.float32)),
        compiler_params=_PARALLEL,
    )(*_fwd_inputs(src, emb, pe, w, b))
    return z.reshape(B, S, d_x), logits.reshape(B, S, d_vocab)


def transpose_forward(trg, emb):
    """logits = trg @ tok_embedding.weight.T   trg: (..., d_x)."""
    *lead, d_x = trg.shape
    n = int(np.prod(lead))
    d_vocab = emb.shape[0]
    tr = _row_tile(n)
    logits = pl.pallas_call(
        _transpose_fwd_kernel,
        grid=(pl.cdiv(n, tr),),
        in_specs=[pl.BlockSpec((tr, d_x), lambda i: (i, 0)),
                  pl.BlockSpec((d_vocab, d_x), lambda i: (0, 0))],
        out_specs=pl.BlockSpec((tr, d_vocab), lambda i: (i, 0)),
        out_shape=jax.ShapeDtypeStruct((n, d_vocab), jnp.float32),
        compiler_params=_PARALLEL,
    )(trg.reshape(n, d_x), emb.astype(jnp.bfloat16))
    return logits.reshape(*lead, d_vocab)


# ----------------------------------- main --------------------------------------
if __name__ == "__main__":
    d_vocab, d_x = 32, 32
    max_length = 16
    B, S = 2, 8

    key = jax.random.PRNGKey(0)
    k_emb, k_w, k_b, k_src = jax.random.split(key, 4)

    # reset_parameters(): N(0, 1/sqrt(d_x)) for embedding and linear weight.
    emb = jax.random.normal(k_emb, (d_vocab, d_x), dtype=jnp.float32) / math.sqrt(d_x)
    w = jax.random.normal(k_w, (d_x, d_x), dtype=jnp.float32) / math.sqrt(d_x)
    b = jax.random.uniform(k_b, (d_x,), jnp.float32,
                           -1.0 / math.sqrt(d_x), 1.0 / math.sqrt(d_x))
    pe = make_sinusoidal_pe(max_length, d_x)
    src = jax.random.randint(k_src, (B, S), 0, d_vocab, dtype=jnp.int32)

    # Fused (forward + transpose_forward in one pallas_call)
    z, logits = jax.jit(embedding_forward_fused)(src, emb, pe, w, b)
    jax.block_until_ready((z, logits))

    # Standalone wrappers (module API parity)
    z_only = jax.jit(embedding_forward)(src, emb, pe, w, b)
    logits_sep = jax.jit(transpose_forward)(z_only, emb)
    jax.block_until_ready((z_only, logits_sep))

    # ---- references --------------------------------------------------------
    scale = math.sqrt(d_x)
    # bf16-matched reference (same MXU-operand casts as the kernel)
    emb_bf_f32 = emb.astype(jnp.bfloat16).astype(jnp.float32)
    w_bf = w.astype(jnp.bfloat16)
    tok_ref = emb_bf_f32[src] * scale
    x_ref = tok_ref + pe[:S][None]
    r_ref = jnp.matmul(x_ref.astype(jnp.bfloat16), w_bf.T,
                       preferred_element_type=jnp.float32) + b + 1.0
    z_ref = x_ref * r_ref
    logits_ref = jnp.matmul(z_ref.astype(jnp.bfloat16), emb.astype(jnp.bfloat16).T,
                            preferred_element_type=jnp.float32)
    # pure-f32 reference (sanity: bf16 MXU operands stay close to the f32 module)
    x_f32 = emb[src] * scale + pe[:S][None]
    z_f32 = x_f32 * (x_f32 @ w.T + b + 1.0)

    assert z.shape == (B, S, d_x) and z.dtype == jnp.float32
    assert logits.shape == (B, S, d_vocab) and logits.dtype == jnp.float32
    assert bool(jnp.all(jnp.isfinite(z))) and bool(jnp.all(jnp.isfinite(logits)))
    assert bool(jnp.allclose(z, z_ref, rtol=2e-3, atol=2e-3))
    assert bool(jnp.allclose(logits, logits_ref, rtol=2e-3, atol=2e-3))
    assert bool(jnp.allclose(z, z_f32, rtol=1e-1, atol=1e-1))
    assert bool(jnp.allclose(z_only, z, rtol=1e-6, atol=1e-6))
    assert bool(jnp.allclose(logits_sep, logits, rtol=1e-6, atol=1e-6))

    print("KERNEL_OK")
</pallas_src>

<mosaic_0001>
module attributes {stable_mosaic.version = 11 : i64} {
  func.func @_embed_fwd_fused_kernel(%arg0: i32, %arg1: memref<16x1xi32, #tpu.memory_space<vmem>>, %arg2: memref<16x32xf32, #tpu.memory_space<vmem>>, %arg3: memref<32x32xbf16, #tpu.memory_space<vmem>>, %arg4: memref<32x32xbf16, #tpu.memory_space<vmem>>, %arg5: memref<1x32xf32, #tpu.memory_space<vmem>>, %arg6: memref<16x32xf32, #tpu.memory_space<vmem>>, %arg7: memref<16x32xf32, #tpu.memory_space<vmem>>) attributes {dimension_semantics = [#tpu.dimension_semantics<parallel>], iteration_bounds = array<i64: 1>, scalar_prefetch = 0 : i64, scratch_operands = 0 : i64, tpu.core_type = #tpu.core_type<tc>, window_params = [{transform_indices = @transform_0, window_bounds = array<i64: 16, 1>}, {transform_indices = @transform_1, window_bounds = array<i64: 16, 32>}, {pipeline_mode = #tpu.pipeline_mode<synchronous>, transform_indices = @transform_2, window_bounds = array<i64: 32, 32>}, {pipeline_mode = #tpu.pipeline_mode<synchronous>, transform_indices = @transform_3, window_bounds = array<i64: 32, 32>}, {pipeline_mode = #tpu.pipeline_mode<synchronous>, transform_indices = @transform_4, window_bounds = array<i64: 1, 32>}, {transform_indices = @transform_5, window_bounds = array<i64: 16, 32>}, {transform_indices = @transform_6, window_bounds = array<i64: 16, 32>}]} {
    %c0 = arith.constant 0 : index
    %c0_0 = arith.constant 0 : index
    %0 = vector.load %arg1[%c0, %c0_0] : memref<16x1xi32, #tpu.memory_space<vmem>>, vector<16x1xi32>
    %1 = tpu.iota {dimensions = array<i32: 1>} : vector<16x32xi32>
    %2 = vector.broadcast %0 : vector<16x1xi32> to vector<16x32xi32>
    %3 = arith.cmpi eq, %1, %2 : vector<16x32xi32>
    %4 = arith.extui %3 : vector<16x32xi1> to vector<16x32xi32>
    %5 = arith.sitofp %4 : vector<16x32xi32> to vector<16x32xf32>
    %6 = arith.truncf %5 : vector<16x32xf32> to vector<16x32xbf16>
    %c0_1 = arith.constant 0 : index
    %c0_2 = arith.constant 0 : index
    %7 = vector.load %arg3[%c0_1, %c0_2] : memref<32x32xbf16, #tpu.memory_space<vmem>>, vector<32x32xbf16>
    %cst = arith.constant dense<0.000000e+00> : vector<16x32xf32>
    %8 = tpu.matmul %6, %7, %cst {dimension_numbers = #tpu.dot_dimension_numbers<[1], [0], [0], [1], [0, 0, 1, 1], [], []>} : vector<16x32xbf16>, vector<32x32xbf16>, vector<16x32xf32> -> vector<16x32xf32>
    %cst_3 = arith.constant 5.65685415 : f32
    %9 = vector.broadcast %cst_3 : f32 to vector<16x32xf32>
    %10 = arith.mulf %8, %9 : vector<16x32xf32>
    %c0_4 = arith.constant 0 : index
    %c0_5 = arith.constant 0 : index
    %11 = vector.load %arg2[%c0_4, %c0_5] : memref<16x32xf32, #tpu.memory_space<vmem>>, vector<16x32xf32>
    %12 = arith.addf %10, %11 : vector<16x32xf32>
    %13 = arith.truncf %12 : vector<16x32xf32> to vector<16x32xbf16>
    %c0_6 = arith.constant 0 : index
    %c0_7 = arith.constant 0 : index
    %14 = vector.load %arg4[%c0_6, %c0_7] : memref<32x32xbf16, #tpu.memory_space<vmem>>, vector<32x32xbf16>
    %cst_8 = arith.constant dense<0.000000e+00> : vector<16x32xf32>
    %15 = tpu.matmul %13, %14, %cst_8 {dimension_numbers = #tpu.dot_dimension_numbers<[1], [1], [0], [0], [0, 0, 1, 0], [], []>} : vector<16x32xbf16>, vector<32x32xbf16>, vector<16x32xf32> -> vector<16x32xf32>
    %c0_9 = arith.constant 0 : index
    %c0_10 = arith.constant 0 : index
    %16 = vector.load %arg5[%c0_9, %c0_10] : memref<1x32xf32, #tpu.memory_space<vmem>>, vector<1x32xf32>
    %17 = vector.broadcast %16 : vector<1x32xf32> to vector<16x32xf32>
    %18 = arith.addf %15, %17 : vector<16x32xf32>
    %cst_11 = arith.constant 1.000000e+00 : f32
    %19 = vector.broadcast %cst_11 : f32 to vector<16x32xf32>
    %20 = arith.addf %18, %19 : vector<16x32xf32>
    %21 = arith.mulf %12, %20 : vector<16x32xf32>
    %c0_12 = arith.constant 0 : index
    %c0_13 = arith.constant 0 : index
    %22 = vector.load %arg6[%c0_12, %c0_13] : memref<16x32xf32, #tpu.memory_space<vmem>>, vector<16x32xf32>
    tpu.vector_store %arg6[%c0_12, %c0_13], %21 {strides = array<i32>} : memref<16x32xf32, #tpu.memory_space<vmem>>, vector<16x32xf32>,
    %23 = arith.truncf %21 : vector<16x32xf32> to vector<16x32xbf16>
    %c0_14 = arith.constant 0 : index
    %c0_15 = arith.constant 0 : index
    %24 = vector.load %arg3[%c0_14, %c0_15] : memref<32x32xbf16, #tpu.memory_space<vmem>>, vector<32x32xbf16>
    %cst_16 = arith.constant dense<0.000000e+00> : vector<16x32xf32>
    %25 = tpu.matmul %23, %24, %cst_16 {dimension_numbers = #tpu.dot_dimension_numbers<[1], [1], [0], [0], [0, 0, 1, 0], [], []>} : vector<16x32xbf16>, vector<32x32xbf16>, vector<16x32xf32> -> vector<16x32xf32>
    %c0_17 = arith.constant 0 : index
    %c0_18 = arith.constant 0 : index
    %26 = vector.load %arg7[%c0_17, %c0_18] : memref<16x32xf32, #tpu.memory_space<vmem>>, vector<16x32xf32>
    tpu.vector_store %arg7[%c0_17, %c0_18], %25 {strides = array<i32>} : memref<16x32xf32, #tpu.memory_space<vmem>>, vector<16x32xf32>,
    return
  }
  func.func @transform_0(%arg0: i32) -> (i32, i32) {
    %c0_i32 = arith.constant 0 : i32
    %c0_i32_0 = arith.constant 0 : i32
    return %arg0, %c0_i32 : i32, i32
  }
  func.func @transform_1(%arg0: i32) -> (i32, i32) {
    %c0_i32 = arith.constant 0 : i32
    %c0_i32_0 = arith.constant 0 : i32
    return %arg0, %c0_i32 : i32, i32
  }
  func.func @transform_2(%arg0: i32) -> (i32, i32) {
    %c0_i32 = arith.constant 0 : i32
    %c0_i32_0 = arith.constant 0 : i32
    %c0_i32_1 = arith.constant 0 : i32
    return %c0_i32, %c0_i32_0 : i32, i32
  }
  func.func @transform_3(%arg0: i32) -> (i32, i32) {
    %c0_i32 = arith.constant 0 : i32
    %c0_i32_0 = arith.constant 0 : i32
    %c0_i32_1 = arith.constant 0 : i32
    return %c0_i32, %c0_i32_0 : i32, i32
  }
  func.func @transform_4(%arg0: i32) -> (i32, i32) {
    %c0_i32 = arith.constant 0 : i32
    %c0_i32_0 = arith.constant 0 : i32
    %c0_i32_1 = arith.constant 0 : i32
    return %c0_i32, %c0_i32_0 : i32, i32
  }
  func.func @transform_5(%arg0: i32) -> (i32, i32) {
    %c0_i32 = arith.constant 0 : i32
    %c0_i32_0 = arith.constant 0 : i32
    return %arg0, %c0_i32 : i32, i32
  }
  func.func @transform_6(%arg0: i32) -> (i32, i32) {
    %c0_i32 = arith.constant 0 : i32
    %c0_i32_0 = arith.constant 0 : i32
    return %arg0, %c0_i32 : i32, i32
  }
}

</mosaic_0001>

<bundles_post_ra>
// kernel: embedding_forward_fused.1
= control target key start
LH: loop header
LB: loop body
LE: loop exit
PB: predicated region body
PF: predicated region fallthrough
CT: control target
= control target key end

     0   :  { %12 = vsyncpa [#allocation3], 0  ;;  %v393_v1 = vmov 0   ;;  %v394_v2 = vmov 0.0   ;;  %s506_s0 = inlined_call_operand.vmem [shape: s32[16,1], index: 0, kind: input, shape index: {}]   ;;  %s507_s1 = inlined_call_operand.vmem [shape: f32[16,32], index: 1, kind: input, shape index: {}]   ;;  %s508_s2 = inlined_call_operand.vmem [shape: bf16[32,32], index: 2, kind: input, shape index: {}]   ;;  %s509_s3 = inlined_call_operand.vmem [shape: bf16[32,32], index: 3, kind: input, shape index: {}]   ;;  %s510_s4 = inlined_call_operand.vmem [shape: f32[1,32], index: 4, kind: input, shape index: {}]   ;;  %s511_s5 = inlined_call_operand.hbm [shape: f32[16,32], index: 5, kind: output, shape index: {0}]   ;;  %s512_s6 = inlined_call_operand.hbm [shape: f32[16,32], index: 6, kind: output, shape index: {1}]  }
   0x1   :  { %v25_v0 = vld [vmem:[%s506_s0] sm:$0xff]  ;;  %338 = vset.pattern.permute.xlu0 %v393_v1  ;;  %307 = vmatprep.subr.bf16.mxu0 %v394_v2  ;;  %v26_v4 = vld [vmem:[%s506_s0 + $0x8] sm:$0xff] }
   0x2   :  { %v339_v3 = vld [vmem:[%s508_s2] sm:$0xff]   ;;  %30 = vperm.xlu0 %338, %v25_v0   ;;  %315 = vmatprep.subr.bf16.mxu1 %v394_v2  ;;  %v340_v5 = vld [vmem:[%s508_s2 + $0x8] sm:$0xff]  }
   0x3   :  { %308 = vmatpush3.bf16.msra.mxu0 %v339_v3 }
   0x4   :  { %309 = vmatprep.subr.bf16.mxu0 %v394_v2 }
   0x5   :  { %13 = vsyncpa [#allocation5], 0  ;;  %vm395_vm0 = vmmov 0   ;;  %v341_v6 = vld [vmem:[%s509_s3] sm:$0xff]   ;;  %vm58_vm1 = vcmask 261120   ;;  %v27_v8 = vlaneseq  ;;  %v342_v15 = vld [vmem:[%s509_s3 + $0x8] sm:$0xff]  }
   0x6   :  { %33 = vperm.xlu0 %338, %v26_v4   ;;  %311 = vmatprep.mubr.msk.bf16.mxu0 %vm395_vm0, %v394_v2  ;;  %v135_v7 = vsel %vm58_vm1, %v341_v6, 0  ;;  %v138_v16 = vsel %vm58_vm1, %v342_v15, 0  ;;  %v343_v17 = vld [vmem:[%s508_s2] sm:$0xff]   ;;  %v106_v24 = vld [vmem:[%s507_s1 + $0x8] sm:$0xff] }
   0x7   :  { %310 = vmatpush3.bf16.msra.mxu0 %v340_v5  ;;  %319 = vmatprep.mubr.msk.bf16.mxu1 %vm395_vm0, %v394_v2  ;;  %v28_v9 = vand.u32 127, %v27_v8  ;;  %v206_v18 = vsel %vm58_vm1, %v343_v17, 0  ;;  %v105_v22 = vld [vmem:[%s507_s1] sm:$0xff]  ;;  %v344_v30 = vld [vmem:[%s508_s2 + $0x8] sm:$0xff]   ;;  %s396_s1 = smov [#allocation2]  }
   0x8   :  { %323 = vmatprep.subr.bf16.mxu0 %v394_v2  ;;  %316 = vmatpush3.bf16.xpose.msra.mxu1 %v135_v7  ;;  %v209_v31 = vsel %vm58_vm1, %v344_v30, 0  ;;  %v291_v32 = vld [vmem:[%s510_s4] ss:$0 sm:$0xff]  ;;  %s259_s2 = sshll.u32 %s396_s1, 4  ;;  %s260_s2 = int_to_ptr.vmem [resolvable:$true] %s259_s2 }
   0x9   :  { %317 = vmatprep.subr.bf16.mxu1 %v394_v2  ;;  %s345_s4 = scalar_lea.vmem %s260_s2, 256  ;;  %p350_p1 = scmp.lt.s32.totalorder %s260_s2, %s260_s2 }
   0xa   :  { %p346_p0 = scmp.ne.s32.totalorder %s260_s2, %s345_s4  ;;  %p351_p2 = scmp.lt.s32.totalorder %s345_s4, %s345_s4 }
   0xc   :  { %p352_p3 = por %p351_p2, %p350_p1 }
   0xe   :  { %p353_p4 = pnand %p352_p3, %p346_p0 }
  0x10   :  { %318 = vmatpush3.bf16.xpose.msra.mxu1 %v138_v16 }
  0x81   :  { %v31_v10 = vpop.permute.xlu0 %30 }
  0x82   :  { %vm35_vm2 = vcmp.eq.s32.totalorder %v28_v9, %v31_v10 }
  0x83   :  { %v286_v12 = vsel %vm35_vm2, 1.0, %v394_v2 }
  0x85   :  { %v34_v11 = vpop.permute.xlu0 %33 }
  0x86   :  { %vm36_vm3 = vcmp.eq.s32.totalorder %v28_v9, %v34_v11 }
  0x87   :  { %v287_v13 = vsel %vm36_vm3, 1.0, %v394_v2 }
  0x88   :  { %v41_v14 = vpack.c.bf16 %v287_v13, %v286_v12 }
  0x8a   :  { %312 = vmatmul.mubr.msk.bf16.vlgmr.msra.gmra.mrb[0].mxu0 %vm58_vm1, %v41_v14 }
  0x8b   :  { %327 = vmatprep.mubr.msk.bf16.mxu0 %vm395_vm0, %v394_v2  ;;  %324 = vmatpush3.bf16.xpose.msra.mxu0 %v206_v18 }
  0x8c   :  { %325 = vmatprep.subr.bf16.mxu0 %v394_v2 }
  0x93   :  { %326 = vmatpush3.bf16.xpose.msra.mxu0 %v209_v31 }
 0x15d   :  { %v96_v19 = vpop.f32.mrb[0].mxu0 }
 0x15e   :  { %v103_v20 = vmul.f32 5.656854, %v96_v19  ;;  %v313_v21 = vpop.f32.mrb[1].mxu0 }
 0x15f   :  { %v99_v23 = vpop.f32.mrb[2].mxu0 }
 0x160   :  { %v104_v25 = vmul.f32 5.656854, %v99_v23  ;;  %v314_v26 = vpop.f32.mrb[3].mxu0  ;;  %v107_v27 = vadd.f32 %v105_v22, %v103_v20 }
 0x162   :  { %v108_v28 = vadd.f32 %v106_v24, %v104_v25 }
 0x164   :  { %v109_v29 = vpack.c.bf16 %v108_v28, %v107_v27 }
 0x166   :  { %320 = vmatmul.mubr.msk.bf16.vlgmr.msra.gmra.mrb[0].mxu1 %vm58_vm1, %v109_v29 }
 0x239   :  { %v174_v33 = vpop.f32.mrb[0].mxu1 }
 0x23a   :  { %v175_v34 = vadd.f32 %v291_v32, %v174_v33  ;;  %v321_v35 = vpop.f32.mrb[1].mxu1 }
 0x23b   :  { %v177_v36 = vpop.f32.mrb[2].mxu1 }
 0x23c   :  { %v181_v37 = vadd.f32 1.0, %v175_v34  ;;  %v178_v38 = vadd.f32 %v291_v32, %v177_v36  ;;  %v322_v39 = vpop.f32.mrb[3].mxu1 }
 0x23e   :  { %v183_v40 = vmul.f32 %v181_v37, %v107_v27  ;;  %v182_v41 = vadd.f32 1.0, %v178_v38 }
 0x240   :  { %185 = vst.msk [vmem:[#allocation2] sm:$0xff] %vm58_vm1, %v183_v40  ;;  %v184_v42 = vmul.f32 %v182_v41, %v108_v28 }
 0x242   :  { %186 = vst.msk [vmem:[#allocation2 + $0x8] sm:$0xff] %vm58_vm1, %v184_v42  ;;  %v187_v43 = vpack.c.bf16 %v184_v42, %v183_v40 }
 0x244   :  { %328 = vmatmul.mubr.msk.bf16.vlgmr.msra.gmra.mrb[4].mxu0 %vm58_vm1, %v187_v43 }
 0x245   :  { %356 = shalt.err (!%p353_p4)
}
 0x246   :  { %s357_s19 = scalar_lea.hbm %s511_s5, 256 }
 0x247   :  { %p358_p5 = scmp.ne.s32.totalorder %s511_s5, %s357_s19  ;;  %p361_p6 = scmp.lt.u32.totalorder %s357_s19, %s511_s5 }
 0x249   :  { %p363_p7 = pnand %p361_p6, %p358_p5 }
 0x24b   :  { %366 = shalt.err (!%p363_p7)
}
 0x24c   :  { %s397_s24 = smov 128   ;;  %s398_s25 = smov 8  }
 0x24d   :  { %265 = dma.vmem_to_hbm [thread:$0]  %s260_s2, 256, %s511_s5, [#allocation3], %s397_s24, %s397_s24, %s398_s25  }
 0x24e   :  { %s399_s28 = smov [#allocation4]  }
 0x24f   :  { %s271_s29 = sshll.u32 %s399_s28, 4  ;;  %s272_s29 = int_to_ptr.vmem [resolvable:$true] %s271_s29 }
 0x250   :  { %s367_s30 = scalar_lea.vmem %s272_s29, 256  ;;  %p372_p9 = scmp.lt.s32.totalorder %s272_s29, %s272_s29 }
 0x251   :  { %p368_p8 = scmp.ne.s32.totalorder %s272_s29, %s367_s30  ;;  %p373_p10 = scmp.lt.s32.totalorder %s367_s30, %s367_s30 }
 0x253   :  { %p374_p11 = por %p373_p10, %p372_p9 }
 0x255   :  { %p375_p12 = pnand %p374_p11, %p368_p8 }
 0x317   :  { %v245_v44 = vpop.f32.mrb[4].mxu0 }
 0x318   :  { %252 = vst.msk [vmem:[#allocation4] sm:$0xff] %vm58_vm1, %v245_v44  ;;  %v329_v45 = vpop.f32.mrb[5].mxu0 }
 0x319   :  { %v248_v46 = vpop.f32.mrb[6].mxu0 }
 0x31a   :  { %253 = vst.msk [vmem:[#allocation4 + $0x8] sm:$0xff] %vm58_vm1, %v248_v46  ;;  %v330_v47 = vpop.f32.mrb[7].mxu0 }
 0x31b   :  { %378 = shalt.err (!%p375_p12)
}
 0x31c   :  { %s379_s7 = scalar_lea.hbm %s512_s6, 256 }
 0x31d   :  { %p380_p13 = scmp.ne.s32.totalorder %s512_s6, %s379_s7  ;;  %p383_p0 = scmp.lt.u32.totalorder %s379_s7, %s512_s6 }
 0x31f   :  { %p385_p1 = pnand %p383_p0, %p380_p13 }
 0x321   :  { %388 = shalt.err (!%p385_p1)
}
 0x322   :  { %277 = dma.vmem_to_hbm [thread:$0]  %s272_s29, 256, %s512_s6, [#allocation5], %s397_s24, %s397_s24, %s398_s25  }
 0x323   :  { %389 = dma.done.wait [#allocation3], 256  }
 0x324   :  { %390 = vsyncadd [#allocation3], 4294967040 }
 0x325   :  { %391 = dma.done.wait [#allocation5], 256  }
 0x326   :  { %392 = vsyncadd [#allocation5], 4294967040 }
 0x327   :  { %284 = vsyncpa [#allocation3], 1 }
 0x328   :  { %285 = vsyncpa [#allocation5], 1 }

</bundles_post_ra>
